<compile_context>
chip_gen: v7x
topology: tpu7x:2x2x1
jax: 0.10.0
libtpu: 0.0.40
codegen_flags: <defaults>
</compile_context>

<pallas_src>
import functools

import jax
import jax.numpy as jnp
from jax.experimental import pallas as pl
from jax.experimental.pallas import tpu as pltpu


NUM_ATOM_TYPE = 120
NUM_CHIRALITY = 3
NUM_BOND_TYPE = 6                 # includes self-loop type (4)
NUM_BOND_DIR = 3
NUM_EDGE_TYPES = NUM_BOND_TYPE * NUM_BOND_DIR   # 18
BN_EPS = 1e-5


def _round_up(v, m):
    return (v + m - 1) // m * m


# ----------------------------------------------------------------------------
# Fused kernel.  Grid = (num_layer, num_row_tiles), both "arbitrary" (the
# ping-pong h scratch carries a dependency across both axes).
#   step (l, i):
#     agg  = A[i-tile, :] @ h_prev + eagg[l, i-tile]     (bf16 MXU, f32 acc)
#     z    = ReLU(agg @ W1[l] + b1[l])                   (bf16 MXU, f32 acc)
#     hnew = z @ W2'[l] + b2'[l]   (BN folded)           (bf16 MXU, f32 acc)
#     h_scratch[(l+1)%2, i-tile] = ReLU(hnew) (no ReLU on last layer), bf16
#   last step: out[c] = mean_{clique[i]==c} h_final[i]   (one-hot bf16 matmul)
# ----------------------------------------------------------------------------
def _fused_gin_kernel(num_layer, num_tiles, tm,
                      adj_ref, eagg_ref, h0_ref, w1_ref, b1_ref, w2_ref, b2_ref,
                      clique_ref, o_ref, h_scr):
    l = pl.program_id(0)
    i = pl.program_id(1)

    # Seed the ping-pong buffer with the initial node embeddings (once).
    @pl.when((l == 0) & (i == 0))
    def _():
        h_scr[0] = h0_ref[...]

    parity_in = l % 2
    parity_out = (l + 1) % 2

    h_prev = h_scr[parity_in]                       # (N, D) bf16, full previous layer
    adj_tile = adj_ref[...]                         # (TM, N) bf16, streamed from HBM

    # GIN sum aggregation over neighbours (+ self loops) + hoisted edge-emb sum.
    agg = jnp.dot(adj_tile, h_prev,
                  preferred_element_type=jnp.float32) + eagg_ref[...]    # (TM, D) f32

    # GIN MLP (bf16 MXU, f32 accumulate; bias/ReLU in f32).
    z = jnp.dot(agg.astype(jnp.bfloat16), w1_ref[...],
                preferred_element_type=jnp.float32) + b1_ref[...]        # (TM, 2D)
    z = jnp.maximum(z, 0.0)
    h_new = jnp.dot(z.astype(jnp.bfloat16), w2_ref[...],
                    preferred_element_type=jnp.float32) + b2_ref[...]    # (TM, D)

    row0 = pl.multiple_of(i * tm, tm)
    is_last_layer = l == num_layer - 1

    @pl.when(is_last_layer)
    def _():
        h_scr[parity_out, pl.ds(row0, tm), :] = h_new.astype(jnp.bfloat16)

    @pl.when(jnp.logical_not(is_last_layer))
    def _():
        h_scr[parity_out, pl.ds(row0, tm), :] = (
            jnp.maximum(h_new, 0.0).astype(jnp.bfloat16))

    # scatter(node_rep, clique, dim=0, reduce='mean') via bf16 one-hot matmul.
    @pl.when(is_last_layer & (i == num_tiles - 1))
    def _():
        h_final = h_scr[parity_out]                           # (N, D) bf16
        c_pad = o_ref.shape[0]
        n_pad = h_final.shape[0]
        row_ids = jax.lax.broadcasted_iota(jnp.int32, (c_pad, n_pad), 0)
        hits = row_ids == clique_ref[...]                     # padded nodes have id -1
        onehot = hits.astype(jnp.bfloat16)                    # exact 0/1
        sums = jnp.dot(onehot, h_final, preferred_element_type=jnp.float32)
        counts = jnp.sum(hits.astype(jnp.float32), axis=1, keepdims=True)
        inv = pl.reciprocal(jnp.maximum(counts, 1.0), approx=True)   # empty clique -> 0
        o_ref[...] = sums * inv


def fused_gnn_forward(adj_bf16, eagg, h0_bf16, w1, b1, w2, b2, clique2d,
                      c_pad, num_layer, tm):
    n_pad, d_pad = h0_bf16.shape
    num_tiles = n_pad // tm
    grid = (num_layer, num_tiles)

    in_specs = [
        pl.BlockSpec((tm, n_pad), lambda l, i: (i, 0)),                        # adj tile
        pl.BlockSpec((pl.Squeezed(), tm, d_pad), lambda l, i: (l, i, 0)),      # eagg tile
        pl.BlockSpec((n_pad, d_pad), lambda l, i: (0, 0)),                     # h0
        pl.BlockSpec((pl.Squeezed(), d_pad, 2 * d_pad), lambda l, i: (l, 0, 0)),   # w1
        pl.BlockSpec((pl.Squeezed(), 1, 2 * d_pad), lambda l, i: (l, 0, 0)),       # b1
        pl.BlockSpec((pl.Squeezed(), 2 * d_pad, d_pad), lambda l, i: (l, 0, 0)),   # w2
        pl.BlockSpec((pl.Squeezed(), 1, d_pad), lambda l, i: (l, 0, 0)),           # b2
        pl.BlockSpec((1, n_pad), lambda l, i: (0, 0)),                         # clique ids
    ]
    out_spec = pl.BlockSpec((c_pad, d_pad), lambda l, i: (0, 0))

    # VMEM budget: streamed tiles are double-buffered, weights per layer,
    # h ping-pong scratch, resident h0/clique/output + epilogue one-hot.
    vmem_bytes = (
        2 * tm * n_pad * 2                                  # adj tile (bf16, 2 bufs)
        + 2 * tm * d_pad * 4                                # eagg tile (f32, 2 bufs)
        + n_pad * d_pad * 2                                 # resident h0 (bf16)
        + 2 * n_pad * d_pad * 2                             # h ping-pong scratch (bf16)
        + 2 * (d_pad * 2 * d_pad + 2 * d_pad * d_pad) * 2   # w1/w2 (bf16, 2 bufs)
        + 2 * (2 * d_pad + d_pad) * 4                       # b1/b2 (f32, 2 bufs)
        + n_pad * 4                                         # clique ids
        + c_pad * d_pad * 4                                 # output block
        + c_pad * n_pad * 2 + c_pad * d_pad * 4             # epilogue one-hot + sums
    )
    # Headroom; capped at 64 MiB so the same limit is valid on v5e/v6e/v7x
    # (raise toward 128 MiB on v5e/v6e for very large graphs).
    vmem_limit = min(int(vmem_bytes * 1.5) + (4 << 20), 64 * 1024 * 1024)

    flops = (2 * num_layer * (n_pad * n_pad * d_pad + 4 * n_pad * d_pad * d_pad)
             + 2 * c_pad * n_pad * d_pad)
    bytes_accessed = (num_layer * n_pad * n_pad * 2          # adj streamed per layer
                      + num_layer * n_pad * d_pad * 4        # eagg
                      + n_pad * d_pad * 2                    # h0
                      + num_layer * 4 * d_pad * d_pad * 2    # weights
                      + c_pad * d_pad * 4)                   # output
    cost = pl.CostEstimate(flops=flops, transcendentals=0,
                           bytes_accessed=bytes_accessed)

    kernel = functools.partial(_fused_gin_kernel, num_layer, num_tiles, tm)
    return pl.pallas_call(
        kernel,
        out_shape=jax.ShapeDtypeStruct((c_pad, d_pad), jnp.float32),
        grid_spec=pltpu.PrefetchScalarGridSpec(
            num_scalar_prefetch=0,
            grid=grid,
            in_specs=in_specs,
            out_specs=out_spec,
            scratch_shapes=[pltpu.VMEM((2, n_pad, d_pad), jnp.bfloat16)],
        ),
        compiler_params=pltpu.CompilerParams(
            dimension_semantics=("arbitrary", "arbitrary"),
            vmem_limit_bytes=vmem_limit,
        ),
        cost_estimate=cost,
    )(adj_bf16, eagg, h0_bf16, w1, b1, w2, b2, clique2d)


# ----------------------------------------------------------------------------
# Model wrapper (synthetic, deterministic parameters)
# ----------------------------------------------------------------------------
def init_params(key, num_layer, emb_dim):
    keys = jax.random.split(key, 2 + 10 * num_layer)
    p = {
        "x_emb1": 0.02 * jax.random.normal(keys[0], (NUM_ATOM_TYPE, emb_dim), jnp.float32),
        "x_emb2": 0.02 * jax.random.normal(keys[1], (NUM_CHIRALITY, emb_dim), jnp.float32),
        "layers": [],
    }
    for l in range(num_layer):
        k = keys[2 + 10 * l: 2 + 10 * (l + 1)]
        layer = {
            "edge_emb1": 0.02 * jax.random.normal(k[0], (NUM_BOND_TYPE, emb_dim), jnp.float32),
            "edge_emb2": 0.02 * jax.random.normal(k[1], (NUM_BOND_DIR, emb_dim), jnp.float32),
            "w1": 0.1 * jax.random.normal(k[2], (emb_dim, 2 * emb_dim), jnp.float32),
            "b1": 0.01 * jax.random.normal(k[3], (1, 2 * emb_dim), jnp.float32),
            "w2": 0.1 * jax.random.normal(k[4], (2 * emb_dim, emb_dim), jnp.float32),
            "b2": 0.01 * jax.random.normal(k[5], (1, emb_dim), jnp.float32),
            # BatchNorm1d eval-mode running statistics / affine (non-trivial so
            # the exact fold is actually exercised).
            "bn_gamma": 1.0 + 0.1 * jax.random.normal(k[6], (1, emb_dim), jnp.float32),
            "bn_beta": 0.02 * jax.random.normal(k[7], (1, emb_dim), jnp.float32),
            "bn_mean": 0.02 * jax.random.normal(k[8], (1, emb_dim), jnp.float32),
            "bn_var": 0.9 + 0.2 * jax.random.uniform(k[9], (1, emb_dim), jnp.float32),
        }
        p["layers"].append(layer)
    return p


def gnn_motifpred3_forward(params, x, edge_index, edge_attr, clique, batch,
                           motif_counts, num_layer, emb_dim, row_tile=256):
    """Mirrors GNN_motifpred3.forward with a GIN molecule_node_model (JK='last', eval)."""
    n = x.shape[0]
    d_pad = _round_up(emb_dim, 128)                     # lane-dense matmuls / stores
    tm = _round_up(min(row_tile, _round_up(n, 8)), 8)   # dst-row tile
    n_pad = _round_up(n, tm)

    # --- initial node embedding (gather = XLA glue), padded + bf16 ---
    h0 = params["x_emb1"][x[:, 0]] + params["x_emb2"][x[:, 1]]          # (N, D)
    h0_pad = jnp.zeros((n_pad, d_pad), jnp.float32).at[:n, :emb_dim].set(h0)
    h0_bf16 = h0_pad.astype(jnp.bfloat16)

    # --- add self loops (edge type 4, dir 0), dense adjacency A[dst, src] ---
    self_idx = jnp.arange(n, dtype=edge_index.dtype)
    src = jnp.concatenate([edge_index[0], self_idx])
    dst = jnp.concatenate([edge_index[1], self_idx])
    self_attr = jnp.stack(
        [jnp.full((n,), 4, edge_attr.dtype), jnp.zeros((n,), edge_attr.dtype)], axis=1)
    eattr = jnp.concatenate([edge_attr, self_attr], axis=0)
    adj = jnp.zeros((n_pad, n_pad), jnp.float32).at[dst, src].add(1.0)
    if not isinstance(adj, jax.core.Tracer):
        # bf16 is exact for integer multi-edge counts up to 256.
        assert float(jnp.max(adj)) <= 256.0, "bf16 adjacency needs edge multiplicity <= 256"
    adj_bf16 = adj.astype(jnp.bfloat16)

    # --- per-dst edge-(type,dir) counts (N, 18), layer-invariant ---
    flat_type = eattr[:, 0].astype(jnp.int32) * NUM_BOND_DIR + eattr[:, 1].astype(jnp.int32)
    ecnt = jnp.zeros((n_pad, NUM_EDGE_TYPES), jnp.float32).at[dst, flat_type].add(1.0)

    # --- stacked per-layer parameters (padded), exact BN fold, bf16 weights ---
    etab_l, w1_l, b1_l, w2_l, b2_l = [], [], [], [], []
    for lp in params["layers"]:
        etab = (lp["edge_emb1"][:, None, :] + lp["edge_emb2"][None, :, :]
                ).reshape(NUM_EDGE_TYPES, emb_dim)
        s = lp["bn_gamma"] / jnp.sqrt(lp["bn_var"] + BN_EPS)            # (1, D)
        shift = lp["bn_beta"] - lp["bn_mean"] * s
        w2f = lp["w2"] * s
        b2f = lp["b2"] * s + shift
        etab_l.append(jnp.zeros((NUM_EDGE_TYPES, d_pad), jnp.float32)
                      .at[:, :emb_dim].set(etab))
        w1_l.append(jnp.zeros((d_pad, 2 * d_pad), jnp.float32)
                    .at[:emb_dim, :2 * emb_dim].set(lp["w1"]))
        b1_l.append(jnp.zeros((1, 2 * d_pad), jnp.float32)
                    .at[:, :2 * emb_dim].set(lp["b1"]))
        w2_l.append(jnp.zeros((2 * d_pad, d_pad), jnp.float32)
                    .at[:2 * emb_dim, :emb_dim].set(w2f))
        b2_l.append(jnp.zeros((1, d_pad), jnp.float32).at[:, :emb_dim].set(b2f))
    etab = jnp.stack(etab_l)                                 # (L, 18, D_pad) f32
    w1 = jnp.stack(w1_l).astype(jnp.bfloat16)                # (L, D_pad, 2D_pad)
    b1 = jnp.stack(b1_l)                                     # (L, 1, 2D_pad) f32
    w2 = jnp.stack(w2_l).astype(jnp.bfloat16)                # (L, 2D_pad, D_pad)
    b2 = jnp.stack(b2_l)                                     # (L, 1, D_pad) f32

    # --- hoisted edge-embedding aggregation for ALL layers (XLA glue) ---
    eagg = jnp.einsum("nt,ltd->lnd", ecnt, etab)             # (L, N_pad, D_pad) f32

    # --- per-graph clique offsetting; padded nodes get id -1 (dropped) ---
    offsets = jnp.concatenate(
        [jnp.zeros((1,), jnp.int32), jnp.cumsum(motif_counts)[:-1].astype(jnp.int32)])
    clique_global = clique.astype(jnp.int32) + offsets[batch]
    clique_pad = jnp.full((1, n_pad), -1, jnp.int32).at[0, :n].set(clique_global)
    num_cliques = int(motif_counts.sum())
    c_pad = _round_up(max(num_cliques, 1), 8)

    out_pad = fused_gnn_forward(adj_bf16, eagg, h0_bf16, w1, b1, w2, b2,
                                clique_pad, c_pad, num_layer, tm)
    return out_pad[:num_cliques, :emb_dim]


# ----------------------------------------------------------------------------
# Pure-JAX f32 reference (for validation)
# ----------------------------------------------------------------------------
def reference_forward(params, x, edge_index, edge_attr, clique, batch,
                      motif_counts, num_layer, emb_dim):
    n = x.shape[0]
    h = params["x_emb1"][x[:, 0]] + params["x_emb2"][x[:, 1]]
    self_idx = jnp.arange(n, dtype=edge_index.dtype)
    src = jnp.concatenate([edge_index[0], self_idx])
    dst = jnp.concatenate([edge_index[1], self_idx])
    self_attr = jnp.stack(
        [jnp.full((n,), 4, edge_attr.dtype), jnp.zeros((n,), edge_attr.dtype)], axis=1)
    eattr = jnp.concatenate([edge_attr, self_attr], axis=0)
    for l, lp in enumerate(params["layers"]):
        eemb = lp["edge_emb1"][eattr[:, 0]] + lp["edge_emb2"][eattr[:, 1]]
        msgs = h[src] + eemb
        agg = jnp.zeros((n, emb_dim), jnp.float32).at[dst].add(msgs)
        z = jnp.maximum(agg @ lp["w1"] + lp["b1"], 0.0)
        hlin = z @ lp["w2"] + lp["b2"]
        s = lp["bn_gamma"] / jnp.sqrt(lp["bn_var"] + BN_EPS)
        hbn = (hlin - lp["bn_mean"]) * s + lp["bn_beta"]
        h = hbn if l == num_layer - 1 else jnp.maximum(hbn, 0.0)
    offsets = jnp.concatenate(
        [jnp.zeros((1,), jnp.int32), jnp.cumsum(motif_counts)[:-1].astype(jnp.int32)])
    cg = clique.astype(jnp.int32) + offsets[batch]
    c = int(motif_counts.sum())
    sums = jnp.zeros((c, emb_dim), jnp.float32).at[cg].add(h)
    cnts = jnp.zeros((c,), jnp.float32).at[cg].add(1.0)
    return sums / jnp.maximum(cnts, 1.0)[:, None]


if __name__ == "__main__":
    key = jax.random.PRNGKey(0)
    k_param, k_x1, k_x2, k_src, k_dst, k_bt, k_bd, k_c0, k_c1 = jax.random.split(key, 9)

    num_layer = 2
    emb_dim = 32
    num_tasks = 1          # defined in __init__ but unused by forward
    N = 32                 # total nodes (2 graphs x 16 nodes)
    E = 64                 # directed edges (before self loops)
    nodes_per_graph = 16
    motif_counts = jnp.array([3, 4], dtype=jnp.int32)   # len(data.motiflabel[i]) per graph

    # node features: [atom_type, chirality]
    x = jnp.stack([
        jax.random.randint(k_x1, (N,), 0, NUM_ATOM_TYPE),
        jax.random.randint(k_x2, (N,), 0, NUM_CHIRALITY),
    ], axis=1)

    # edges within each graph
    graph_of_edge = jnp.repeat(jnp.arange(2), E // 2)
    src = jax.random.randint(k_src, (E,), 0, nodes_per_graph) + graph_of_edge * nodes_per_graph
    dst = jax.random.randint(k_dst, (E,), 0, nodes_per_graph) + graph_of_edge * nodes_per_graph
    edge_index = jnp.stack([src, dst], axis=0)
    edge_attr = jnp.stack([
        jax.random.randint(k_bt, (E,), 0, 4),      # bond type (self-loop type 4 added later)
        jax.random.randint(k_bd, (E,), 0, NUM_BOND_DIR),
    ], axis=1)

    batch = jnp.repeat(jnp.arange(2, dtype=jnp.int32), nodes_per_graph)
    clique = jnp.concatenate([
        jax.random.randint(k_c0, (nodes_per_graph,), 0, int(motif_counts[0])),
        jax.random.randint(k_c1, (nodes_per_graph,), 0, int(motif_counts[1])),
    ]).astype(jnp.int32)

    params = init_params(k_param, num_layer, emb_dim)

    # row_tile=16 so the demo exercises the streamed multi-tile grid (2 layers x 2 tiles).
    out = gnn_motifpred3_forward(params, x, edge_index, edge_attr, clique, batch,
                                 motif_counts, num_layer, emb_dim, row_tile=16)
    out = jax.block_until_ready(out)

    ref = reference_forward(params, x, edge_index, edge_attr, clique, batch,
                            motif_counts, num_layer, emb_dim)
    ref = jax.block_until_ready(ref)

    assert out.shape == (int(motif_counts.sum()), emb_dim)
    assert jnp.all(jnp.isfinite(out))
    assert jnp.allclose(out, ref, atol=5e-3, rtol=5e-2), (
        f"max abs err {float(jnp.max(jnp.abs(out - ref)))}")
    print("KERNEL_OK")
</pallas_src>

<mosaic_0001>
module attributes {stable_mosaic.version = 11 : i64} {
  func.func @_fused_gin_kernel(%arg0: i32, %arg1: i32, %arg2: memref<16x32xbf16, #tpu.memory_space<vmem>>, %arg3: memref<1x16x128xf32, #tpu.memory_space<vmem>>, %arg4: memref<32x128xbf16, #tpu.memory_space<vmem>>, %arg5: memref<1x128x256xbf16, #tpu.memory_space<vmem>>, %arg6: memref<1x1x256xf32, #tpu.memory_space<vmem>>, %arg7: memref<1x256x128xbf16, #tpu.memory_space<vmem>>, %arg8: memref<1x1x128xf32, #tpu.memory_space<vmem>>, %arg9: memref<1x32xi32, #tpu.memory_space<vmem>>, %arg10: memref<8x128xf32, #tpu.memory_space<vmem>>, %arg11: memref<2x32x128xbf16, #tpu.memory_space<vmem>>) attributes {dimension_semantics = [#tpu.dimension_semantics<arbitrary>, #tpu.dimension_semantics<arbitrary>], iteration_bounds = array<i64: 2, 2>, scalar_prefetch = 0 : i64, scratch_operands = 1 : i64, tpu.core_type = #tpu.core_type<tc>, window_params = [{transform_indices = @transform_0, window_bounds = array<i64: 16, 32>}, {transform_indices = @transform_1, window_bounds = array<i64: 1, 16, 128>}, {pipeline_mode = #tpu.pipeline_mode<synchronous>, transform_indices = @transform_2, window_bounds = array<i64: 32, 128>}, {transform_indices = @transform_3, window_bounds = array<i64: 1, 128, 256>}, {transform_indices = @transform_4, window_bounds = array<i64: 1, 1, 256>}, {transform_indices = @transform_5, window_bounds = array<i64: 1, 256, 128>}, {transform_indices = @transform_6, window_bounds = array<i64: 1, 1, 128>}, {pipeline_mode = #tpu.pipeline_mode<synchronous>, transform_indices = @transform_7, window_bounds = array<i64: 1, 32>}, {pipeline_mode = #tpu.pipeline_mode<synchronous>, transform_indices = @transform_8, window_bounds = array<i64: 8, 128>}]} {
    %c0_i32 = arith.constant 0 : i32
    %0 = arith.cmpi eq, %arg0, %c0_i32 : i32
    %c0_i32_0 = arith.constant 0 : i32
    %1 = arith.cmpi eq, %arg1, %c0_i32_0 : i32
    %2 = arith.andi %0, %1 : i1
    %3 = arith.extui %2 : i1 to i32
    %c0_i32_1 = arith.constant 0 : i32
    %4 = arith.cmpi ne, %3, %c0_i32_1 : i32
    scf.if %4 {
      %c0_39 = arith.constant 0 : index
      %c0_40 = arith.constant 0 : index
      %64 = vector.load %arg4[%c0_39, %c0_40] : memref<32x128xbf16, #tpu.memory_space<vmem>>, vector<32x128xbf16>
      %c0_41 = arith.constant 0 : index
      %c0_42 = arith.constant 0 : index
      %c0_43 = arith.constant 0 : index
      %65 = vector.load %arg11[%c0_41, %c0_42, %c0_43] : memref<2x32x128xbf16, #tpu.memory_space<vmem>>, vector<1x32x128xbf16>
      %66 = vector.shape_cast %65 : vector<1x32x128xbf16> to vector<32x128xbf16>
      %67 = vector.shape_cast %64 : vector<32x128xbf16> to vector<1x32x128xbf16>
      tpu.vector_store %arg11[%c0_41, %c0_42, %c0_43], %67 {strides = array<i32>} : memref<2x32x128xbf16, #tpu.memory_space<vmem>>, vector<1x32x128xbf16>,
    } else {
    }
    %c2_i32 = arith.constant 2 : i32
    %c0_i32_2 = arith.constant 0 : i32
    %5 = arith.cmpi eq, %c2_i32, %c0_i32_2 : i32
    %c1_i32 = arith.constant 1 : i32
    %6 = arith.select %5, %c1_i32, %c2_i32 : i32
    %7 = arith.remsi %arg0, %6 : i32
    %c0_i32_3 = arith.constant 0 : i32
    %8 = arith.cmpi ne, %7, %c0_i32_3 : i32
    %c0_i32_4 = arith.constant 0 : i32
    %9 = arith.cmpi slt, %7, %c0_i32_4 : i32
    %c0_i32_5 = arith.constant 0 : i32
    %10 = arith.cmpi slt, %6, %c0_i32_5 : i32
    %11 = arith.xori %9, %10 : i1
    %12 = arith.andi %11, %8 : i1
    %13 = arith.addi %7, %6 : i32
    %14 = arith.select %12, %13, %7 : i32
    %c1_i32_6 = arith.constant 1 : i32
    %15 = arith.addi %arg0, %c1_i32_6 : i32
    %c2_i32_7 = arith.constant 2 : i32
    %c0_i32_8 = arith.constant 0 : i32
    %16 = arith.cmpi eq, %c2_i32_7, %c0_i32_8 : i32
    %c1_i32_9 = arith.constant 1 : i32
    %17 = arith.select %16, %c1_i32_9, %c2_i32_7 : i32
    %18 = arith.remsi %15, %17 : i32
    %c0_i32_10 = arith.constant 0 : i32
    %19 = arith.cmpi ne, %18, %c0_i32_10 : i32
    %c0_i32_11 = arith.constant 0 : i32
    %20 = arith.cmpi slt, %18, %c0_i32_11 : i32
    %c0_i32_12 = arith.constant 0 : i32
    %21 = arith.cmpi slt, %17, %c0_i32_12 : i32
    %22 = arith.xori %20, %21 : i1
    %23 = arith.andi %22, %19 : i1
    %24 = arith.addi %18, %17 : i32
    %25 = arith.select %23, %24, %18 : i32
    %26 = arith.index_cast %14 : i32 to index
    %c0 = arith.constant 0 : index
    %c0_13 = arith.constant 0 : index
    %27 = vector.load %arg11[%26, %c0, %c0_13] : memref<2x32x128xbf16, #tpu.memory_space<vmem>>, vector<1x32x128xbf16>
    %28 = vector.shape_cast %27 : vector<1x32x128xbf16> to vector<32x128xbf16>
    %c0_14 = arith.constant 0 : index
    %c0_15 = arith.constant 0 : index
    %29 = vector.load %arg2[%c0_14, %c0_15] : memref<16x32xbf16, #tpu.memory_space<vmem>>, vector<16x32xbf16>
    %cst = arith.constant dense<0.000000e+00> : vector<16x128xf32>
    %30 = tpu.matmul %29, %28, %cst {dimension_numbers = #tpu.dot_dimension_numbers<[1], [0], [0], [1], [0, 0, 1, 1], [], []>} : vector<16x32xbf16>, vector<32x128xbf16>, vector<16x128xf32> -> vector<16x128xf32>
    %c0_16 = arith.constant 0 : index
    %c0_17 = arith.constant 0 : index
    %c0_18 = arith.constant 0 : index
    %31 = vector.load %arg3[%c0_16, %c0_17, %c0_18] : memref<1x16x128xf32, #tpu.memory_space<vmem>>, vector<1x16x128xf32>
    %32 = vector.shape_cast %31 : vector<1x16x128xf32> to vector<16x128xf32>
    %33 = arith.addf %30, %32 : vector<16x128xf32>
    %34 = arith.truncf %33 : vector<16x128xf32> to vector<16x128xbf16>
    %c0_19 = arith.constant 0 : index
    %c0_20 = arith.constant 0 : index
    %c0_21 = arith.constant 0 : index
    %35 = vector.load %arg5[%c0_19, %c0_20, %c0_21] : memref<1x128x256xbf16, #tpu.memory_space<vmem>>, vector<1x128x256xbf16>
    %36 = vector.shape_cast %35 : vector<1x128x256xbf16> to vector<128x256xbf16>
    %cst_22 = arith.constant dense<0.000000e+00> : vector<16x256xf32>
    %37 = tpu.matmul %34, %36, %cst_22 {dimension_numbers = #tpu.dot_dimension_numbers<[1], [0], [0], [1], [0, 0, 1, 1], [], []>} : vector<16x128xbf16>, vector<128x256xbf16>, vector<16x256xf32> -> vector<16x256xf32>
    %c0_23 = arith.constant 0 : index
    %c0_24 = arith.constant 0 : index
    %c0_25 = arith.constant 0 : index
    %38 = vector.load %arg6[%c0_23, %c0_24, %c0_25] : memref<1x1x256xf32, #tpu.memory_space<vmem>>, vector<1x1x256xf32>
    %39 = vector.shape_cast %38 : vector<1x1x256xf32> to vector<1x256xf32>
    %40 = vector.broadcast %39 : vector<1x256xf32> to vector<16x256xf32>
    %41 = arith.addf %37, %40 : vector<16x256xf32>
    %cst_26 = arith.constant 0.000000e+00 : f32
    %42 = vector.broadcast %cst_26 : f32 to vector<16x256xf32>
    %43 = arith.maximumf %41, %42 : vector<16x256xf32>
    %44 = arith.truncf %43 : vector<16x256xf32> to vector<16x256xbf16>
    %c0_27 = arith.constant 0 : index
    %c0_28 = arith.constant 0 : index
    %c0_29 = arith.constant 0 : index
    %45 = vector.load %arg7[%c0_27, %c0_28, %c0_29] : memref<1x256x128xbf16, #tpu.memory_space<vmem>>, vector<1x256x128xbf16>
    %46 = vector.shape_cast %45 : vector<1x256x128xbf16> to vector<256x128xbf16>
    %cst_30 = arith.constant dense<0.000000e+00> : vector<16x128xf32>
    %47 = tpu.matmul %44, %46, %cst_30 {dimension_numbers = #tpu.dot_dimension_numbers<[1], [0], [0], [1], [0, 0, 1, 1], [], []>} : vector<16x256xbf16>, vector<256x128xbf16>, vector<16x128xf32> -> vector<16x128xf32>
    %c0_31 = arith.constant 0 : index
    %c0_32 = arith.constant 0 : index
    %c0_33 = arith.constant 0 : index
    %48 = vector.load %arg8[%c0_31, %c0_32, %c0_33] : memref<1x1x128xf32, #tpu.memory_space<vmem>>, vector<1x1x128xf32>
    %49 = vector.shape_cast %48 : vector<1x1x128xf32> to vector<1x128xf32>
    %50 = vector.broadcast %49 : vector<1x128xf32> to vector<16x128xf32>
    %51 = arith.addf %47, %50 : vector<16x128xf32>
    %c16_i32 = arith.constant 16 : i32
    %52 = arith.muli %arg1, %c16_i32 : i32
    %53 = tpu.assume_multiple %52, 16 : i32
    %c1_i32_34 = arith.constant 1 : i32
    %54 = arith.cmpi eq, %arg0, %c1_i32_34 : i32
    %55 = arith.extui %54 : i1 to i32
    %c0_i32_35 = arith.constant 0 : i32
    %56 = arith.cmpi ne, %55, %c0_i32_35 : i32
    scf.if %56 {
      %64 = arith.truncf %51 : vector<16x128xf32> to vector<16x128xbf16>
      %65 = arith.index_cast %25 : i32 to index
      %66 = arith.index_cast %53 : i32 to index
      %c0_39 = arith.constant 0 : index
      %67 = vector.load %arg11[%65, %66, %c0_39] : memref<2x32x128xbf16, #tpu.memory_space<vmem>>, vector<1x16x128xbf16>
      %68 = vector.shape_cast %67 : vector<1x16x128xbf16> to vector<16x128xbf16>
      %69 = vector.shape_cast %64 : vector<16x128xbf16> to vector<1x16x128xbf16>
      tpu.vector_store %arg11[%65, %66, %c0_39], %69 {strides = array<i32>} : memref<2x32x128xbf16, #tpu.memory_space<vmem>>, vector<1x16x128xbf16>,
    } else {
    }
    %true = arith.constant true
    %57 = arith.xori %54, %true : i1
    %58 = arith.extui %57 : i1 to i32
    %c0_i32_36 = arith.constant 0 : i32
    %59 = arith.cmpi ne, %58, %c0_i32_36 : i32
    scf.if %59 {
      %cst_39 = arith.constant 0.000000e+00 : f32
      %64 = vector.broadcast %cst_39 : f32 to vector<16x128xf32>
      %65 = arith.maximumf %51, %64 : vector<16x128xf32>
      %66 = arith.truncf %65 : vector<16x128xf32> to vector<16x128xbf16>
      %67 = arith.index_cast %25 : i32 to index
      %68 = arith.index_cast %53 : i32 to index
      %c0_40 = arith.constant 0 : index
      %69 = vector.load %arg11[%67, %68, %c0_40] : memref<2x32x128xbf16, #tpu.memory_space<vmem>>, vector<1x16x128xbf16>
      %70 = vector.shape_cast %69 : vector<1x16x128xbf16> to vector<16x128xbf16>
      %71 = vector.shape_cast %66 : vector<16x128xbf16> to vector<1x16x128xbf16>
      tpu.vector_store %arg11[%67, %68, %c0_40], %71 {strides = array<i32>} : memref<2x32x128xbf16, #tpu.memory_space<vmem>>, vector<1x16x128xbf16>,
    } else {
    }
    %c1_i32_37 = arith.constant 1 : i32
    %60 = arith.cmpi eq, %arg1, %c1_i32_37 : i32
    %61 = arith.andi %54, %60 : i1
    %62 = arith.extui %61 : i1 to i32
    %c0_i32_38 = arith.constant 0 : i32
    %63 = arith.cmpi ne, %62, %c0_i32_38 : i32
    scf.if %63 {
      %64 = arith.index_cast %25 : i32 to index
      %c0_39 = arith.constant 0 : index
      %c0_40 = arith.constant 0 : index
      %65 = vector.load %arg11[%64, %c0_39, %c0_40] : memref<2x32x128xbf16, #tpu.memory_space<vmem>>, vector<1x32x128xbf16>
      %66 = vector.shape_cast %65 : vector<1x32x128xbf16> to vector<32x128xbf16>
      %67 = tpu.iota {dimensions = array<i32: 0>} : vector<8x32xi32>
      %c0_41 = arith.constant 0 : index
      %c0_42 = arith.constant 0 : index
      %68 = vector.load %arg9[%c0_41, %c0_42] : memref<1x32xi32, #tpu.memory_space<vmem>>, vector<1x32xi32>
      %69 = vector.broadcast %68 : vector<1x32xi32> to vector<8x32xi32>
      %70 = arith.cmpi eq, %67, %69 : vector<8x32xi32>
      %71 = arith.extui %70 : vector<8x32xi1> to vector<8x32xi32>
      %72 = arith.sitofp %71 : vector<8x32xi32> to vector<8x32xf32>
      %73 = arith.truncf %72 : vector<8x32xf32> to vector<8x32xbf16>
      %cst_43 = arith.constant dense<0.000000e+00> : vector<8x128xf32>
      %74 = tpu.matmul %73, %66, %cst_43 {dimension_numbers = #tpu.dot_dimension_numbers<[1], [0], [0], [1], [0, 0, 1, 1], [], []>} : vector<8x32xbf16>, vector<32x128xbf16>, vector<8x128xf32> -> vector<8x128xf32>
      %75 = arith.extui %70 : vector<8x32xi1> to vector<8x32xi32>
      %76 = arith.sitofp %75 : vector<8x32xi32> to vector<8x32xf32>
      %cst_44 = arith.constant dense<0.000000e+00> : vector<8xf32>
      %77 = vector.multi_reduction <add>, %76, %cst_44 [1] : vector<8x32xf32> to vector<8xf32>
      %78 = vector.shape_cast %77 : vector<8xf32> to vector<8x1xf32>
      %cst_45 = arith.constant 1.000000e+00 : f32
      %79 = vector.broadcast %cst_45 : f32 to vector<8x1xf32>
      %80 = arith.maximumf %78, %79 : vector<8x1xf32>
      %81 = tpu.reciprocal %80 {approx = true} : vector<8x1xf32> -> vector<8x1xf32>
      %82 = vector.broadcast %81 : vector<8x1xf32> to vector<8x128xf32>
      %83 = arith.mulf %74, %82 : vector<8x128xf32>
      %c0_46 = arith.constant 0 : index
      %c0_47 = arith.constant 0 : index
      %84 = vector.load %arg10[%c0_46, %c0_47] : memref<8x128xf32, #tpu.memory_space<vmem>>, vector<8x128xf32>
      tpu.vector_store %arg10[%c0_46, %c0_47], %83 {strides = array<i32>} : memref<8x128xf32, #tpu.memory_space<vmem>>, vector<8x128xf32>,
    } else {
    }
    return
  }
  func.func @transform_0(%arg0: i32, %arg1: i32) -> (i32, i32) {
    %c0_i32 = arith.constant 0 : i32
    %c0_i32_0 = arith.constant 0 : i32
    return %arg1, %c0_i32 : i32, i32
  }
  func.func @transform_1(%arg0: i32, %arg1: i32) -> (i32, i32, i32) {
    %c0_i32 = arith.constant 0 : i32
    %c0_i32_0 = arith.constant 0 : i32
    return %arg0, %arg1, %c0_i32 : i32, i32, i32
  }
  func.func @transform_2(%arg0: i32, %arg1: i32) -> (i32, i32) {
    %c0_i32 = arith.constant 0 : i32
    %c0_i32_0 = arith.constant 0 : i32
    %c0_i32_1 = arith.constant 0 : i32
    return %c0_i32, %c0_i32_0 : i32, i32
  }
  func.func @transform_3(%arg0: i32, %arg1: i32) -> (i32, i32, i32) {
    %c0_i32 = arith.constant 0 : i32
    %c0_i32_0 = arith.constant 0 : i32
    %c0_i32_1 = arith.constant 0 : i32
    return %arg0, %c0_i32, %c0_i32_0 : i32, i32, i32
  }
  func.func @transform_4(%arg0: i32, %arg1: i32) -> (i32, i32, i32) {
    %c0_i32 = arith.constant 0 : i32
    %c0_i32_0 = arith.constant 0 : i32
    %c0_i32_1 = arith.constant 0 : i32
    return %arg0, %c0_i32, %c0_i32_0 : i32, i32, i32
  }
  func.func @transform_5(%arg0: i32, %arg1: i32) -> (i32, i32, i32) {
    %c0_i32 = arith.constant 0 : i32
    %c0_i32_0 = arith.constant 0 : i32
    %c0_i32_1 = arith.constant 0 : i32
    return %arg0, %c0_i32, %c0_i32_0 : i32, i32, i32
  }
  func.func @transform_6(%arg0: i32, %arg1: i32) -> (i32, i32, i32) {
    %c0_i32 = arith.constant 0 : i32
    %c0_i32_0 = arith.constant 0 : i32
    %c0_i32_1 = arith.constant 0 : i32
    return %arg0, %c0_i32, %c0_i32_0 : i32, i32, i32
  }
  func.func @transform_7(%arg0: i32, %arg1: i32) -> (i32, i32) {
    %c0_i32 = arith.constant 0 : i32
    %c0_i32_0 = arith.constant 0 : i32
    %c0_i32_1 = arith.constant 0 : i32
    return %c0_i32, %c0_i32_0 : i32, i32
  }
  func.func @transform_8(%arg0: i32, %arg1: i32) -> (i32, i32) {
    %c0_i32 = arith.constant 0 : i32
    %c0_i32_0 = arith.constant 0 : i32
    %c0_i32_1 = arith.constant 0 : i32
    return %c0_i32, %c0_i32_0 : i32, i32
  }
}

</mosaic_0001>

<bundles_post_ra>
// kernel: tpu_custom_call.1
= control target key start
LH: loop header
LB: loop body
LE: loop exit
PB: predicated region body
PF: predicated region fallthrough
CT: control target
= control target key end

     0   :  { %s2483_s0 = inlined_call_operand.hbm [shape: bf16[32,32], index: 0, kind: input, shape index: {}]   ;;  %s2484_s1 = inlined_call_operand.hbm [shape: f32[2,32,128], index: 1, kind: input, shape index: {}]   ;;  %s2485_s2 = inlined_call_operand.hbm [shape: bf16[32,128], index: 2, kind: input, shape index: {}]   ;;  %s2486_s3 = inlined_call_operand.hbm [shape: bf16[2,128,256], index: 3, kind: input, shape index: {}]   ;;  %s2487_s4 = inlined_call_operand.vmem [shape: f32[2,1,256], index: 4, kind: input, shape index: {}]   ;;  %s2488_s5 = inlined_call_operand.hbm [shape: bf16[2,256,128], index: 5, kind: input, shape index: {}]   ;;  %s2489_s6 = inlined_call_operand.vmem [shape: f32[2,1,128], index: 6, kind: input, shape index: {}]   ;;  %s2490_s7 = inlined_call_operand.vmem [shape: s32[1,32], index: 7, kind: input, shape index: {}]   ;;  %s2491_s8 = inlined_call_operand.hbm [shape: f32[8,128], index: 8, kind: output, shape index: {}]  }
   0x1   :  { %2524 = sst [smem:[#allocation29_spill]] %s2483_s0 }
   0x2   :  { %2525 = sst [smem:[#allocation30_spill]] %s2485_s2 }
   0x3   :  { %2526 = sst [smem:[#allocation31_spill]] %s2486_s3 }
   0x4   :  { %2527 = sst [smem:[#allocation32_spill]] %s2487_s4 }
   0x5   :  { %2528 = sst [smem:[#allocation33_spill]] %s2489_s6 }
   0x6   :  { %2529 = sst [smem:[#allocation34_spill]] %s2490_s7 }
   0x7   :  { %2530 = sst [smem:[#allocation35_spill]] %s2491_s8 }
   0x8   :  { %13 = vsyncpa [#allocation4], 0 }
   0x9   :  { %15 = vsyncpa [#allocation4 + $0x1], 0 }
   0xa   :  { %16 = vsyncpa [#allocation7], 0 }
   0xb   :  { %18 = vsyncpa [#allocation7 + $0x1], 0 }
   0xc   :  { %19 = vsyncpa [#allocation10], 0 }
   0xd   :  { %21 = vsyncpa [#allocation10 + $0x1], 0 }
   0xe   :  { %22 = vsyncpa [#allocation5], 0  ;;  %s1919_s27 = smov 0   ;;  %s1921_s28 = smov 0  }
   0xf   :  { %s1923_s29 = smov 0   ;;  %s1925_s30 = smov 0  }
  0x10   :  { %s1927_s9 = smov 0   ;;  %s1929_s10 = smov 0  }
  0x11   :  { %s1931_s11 = smov 0   ;;  %s1933_s12 = smov 0  }
  0x12   :  { %s1935_s13 = smov 0   ;;  %s1937_s14 = smov 0  }
  0x13   :  { %s1939_s15 = smov 0   ;;  %s1941_s16 = smov 0  }
  0x14   :  { %s1943_s17 = smov 0   ;;  %s1945_s18 = smov 0  }
  0x15 LB: > { %2531 = sst [smem:[#allocation18_spill]] %s1809_s28  ;;  %s1990_s19 = sadd.s32 4294967295, %s1857_s18   ;;  %s1857_s18 = sphi %s1945_s18, %s28_s18   ;;  %s1853_s17 = sphi %s1943_s17, %s2614_s17   ;;  %s1849_s16 = sphi %s1941_s16, %s2602_s16   ;;  %s1845_s15 = sphi %s1939_s15, %s2613_s15   ;;  %s1841_s14 = sphi %s1937_s14, %s2612_s14   ;;  %s1837_s13 = sphi %s1935_s13, %s2611_s13   ;;  %s1833_s12 = sphi %s1933_s12, %s2610_s12   ;;  %s1829_s11 = sphi %s1931_s11, %s2609_s11   ;;  %s1825_s10 = sphi %s1929_s10, %s2608_s10   ;;  %s1821_s9 = sphi %s1927_s9, %s2607_s9   ;;  %s1817_s30 = sphi %s1925_s30, %s2606_s30   ;;  %s1813_s29 = sphi %s1923_s29, %s2605_s29   ;;  %s1809_s28 = sphi %s1921_s28, %s2604_s28   ;;  %s1805_s27 = sphi %s1919_s27, %s2598_s27  }
  0x16   : > { %2532 = sst [smem:[#allocation19_spill]] %s1833_s12  ;;  %p1214_p0 = scmp.ge.s32.totalorder %s1857_s18, 1 }
  0x17   : > { %2533 = sst [smem:[#allocation20_spill]] %s1841_s14  ;;  %p2493_p1 = scmp.eq.s32.totalorder %s1990_s19, 0 }
  0x18   : > { %2534 = sst [smem:[#allocation21_spill]] %s1845_s15  ;;  %p266_p2 = scmp.lt.s32.totalorder %s1857_s18, 5 }
  0x19   : > { %2535 = sst [smem:[#allocation22_spill]] %s1849_s16  ;;  %s1859_s21 = smov [#allocation8]  }
  0x1a   : > { %p1995_p3 = pnand %p1214_p0, %p266_p2  ;;  %s278_s22 = sshll.u32 %s1859_s21, 4  ;;  %s279_s22 = int_to_ptr.vmem [resolvable:$true] %s278_s22 }
  0x1b   : > { %s2539_s2 = sld [smem:[#allocation30_spill]] }
  0x1c   : > { %s2536_s20 = scalar_select %p1995_p3, 1, 0 }
  0x1d   : > { %p1363_p4 = pneg %p1995_p3 }
  0x1e   : > { %2537 = sst [smem:[#allocation23_spill]] %s2536_s20 }
  0x1f   : > { %p2003_p5 = pnand %p1363_p4, %p2493_p1 }
  0x21   : > { %s1553_s26 = scalar_lea.hbm %s2539_s2, 256  ;;  %p1555_p7 = pneg %p2003_p5 }
  0x22   : > { %p1554_p6 = scmp.ne.s32.totalorder %s2539_s2, %s1553_s26  ;;  %p1560_p10 = scmp.lt.u32.totalorder %s1553_s26, %s2539_s2 }
  0x24   : > { %p1556_p8 = pnand %p1555_p7, %p1554_p6 }
  0x26   : > { %p1557_p9 = pneg %p1556_p8 }
  0x28   : > { %p1562_p11 = pnand %p1560_p10, %p1557_p9 }
  0x2a   : > { %1565 = shalt.err (!%p1562_p11)
}
  0x2b   : > { %s1566_s6 = scalar_lea.vmem %s279_s22, 256  ;;  %p1574_p2 = scmp.lt.s32.totalorder %s279_s22, %s279_s22 }
  0x2c   : > { %p1567_p12 = scmp.ne.s32.totalorder %s279_s22, %s1566_s6  ;;  %p1575_p4 = scmp.lt.s32.totalorder %s1566_s6, %s1566_s6 }
  0x2e   : > { %p1569_p13 = pnand %p1567_p12, %p1555_p7  ;;  %p1576_p1 = por %p1575_p4, %p1574_p2 }
  0x30   : > { %p1570_p0 = pneg %p1569_p13 }
  0x32   : > { %p1577_p3 = pnand %p1576_p1, %p1570_p0 }
  0x34   : > { %1580 = shalt.err (!%p1577_p3)
}
  0x35   : > { %s2497_s7 = smov 64   ;;  %s2499_s4 = smov 4  }
  0x36   : > { %1366 = dma.hbm_to_vmem [thread:$0]  (!%p2003_p5), %s2539_s2, 256, %s279_s22, [#allocation7], %s2497_s7, %s2497_s7, %s2499_s4  }
  0x37   : > { %p2503_p1 = scmp.eq.s32.totalorder %s1857_s18, 0  ;;  %p129_p3 = scmp.ne.s32.totalorder %s1813_s29, %s1809_s28 }
  0x38   : > { %p135_p6 = scmp.ne.s32.totalorder %s1809_s28, %s1805_s27  ;;  %s2504_s26 = sand.u32 1, %s1857_s18  }
  0x39   : > { %p2540_p7 = scmp.eq.s32.totalorder %s1990_s19, 0  ;;  %p2502_p9 = scmp.lt.s32.totalorder %s1857_s18, 4 }
  0x3a   : > { %p131_p10 = por %p129_p3, %p2503_p1  ;;  %s341_s23 = sand.u32 1, %s1813_s29  }
  0x3b   : > { %p2036_p8 = por %p135_p6, %p2540_p7  ;;  %s2501_s14 = sshll.u32 %s1853_s17, 11 }
  0x3c   : > { %s2045_s15 = sshll.u32 %s341_s23, 7  ;;  %s2543_s3 = sld [smem:[#allocation31_spill]] }
  0x3d   : > { %s2541_s21 = scalar_select %p2036_p8, 1, 0 }
  0x3e   : > { %p2056_p5 = pnand %p2502_p9, %p131_p10  ;;  %s343_s23 = scalar_lea.vmem [#allocation9], %s2045_s15 }
  0x3f   : > { %2542 = sst [smem:[#allocation24_spill]] %s2541_s21  ;;  %s350_s7 = sshll.u32 %s343_s23, 4  ;;  %s2061_s7 = int_to_ptr.vmem [resolvable:$true] %s350_s7 }
  0x40   : > { %s2544_s8 = scalar_select %p2056_p5, 1, 0 }
  0x41   : > { %s2065_s22 = scalar_lea.sflag [#allocation10], %s2504_s26  ;;  %p2516_p12 = pneg %p2056_p5 }
  0x42   : > { %s2052_s27 = scalar_lea.hbm %s2543_s3, %s2501_s14  ;;  %2545 = sst [smem:[#allocation25_spill]] %s2065_s22 }
  0x43   : > { %s1581_s6 = scalar_lea.hbm %s2052_s27, 2048  ;;  %s1586_s24 = scalar_lea.hbm %s2543_s3, 4096 }
  0x44   : > { %p1582_p11 = scmp.ne.s32.totalorder %s2052_s27, %s1581_s6  ;;  %p1587_p2 = scmp.lt.u32.totalorder %s2052_s27, %s2543_s3 }
  0x45   : > { %p1588_p4 = scmp.lt.u32.totalorder %s1586_s24, %s1581_s6  ;;  %p1590_p6 = scmp.lt.u32.totalorder %s1581_s6, %s2052_s27 }
  0x46   : > { %p1584_p13 = pnand %p2516_p12, %p1582_p11 }
  0x47   : > { %p1589_p3 = por %p1588_p4, %p1587_p2 }
  0x48   : > { %p1585_p0 = pneg %p1584_p13 }
  0x49   : > { %p1591_p7 = por %p1590_p6, %p1589_p3 }
  0x4b   : > { %p1592_p10 = pnand %p1591_p7, %p1585_p0 }
  0x4d   : > { %1595 = shalt.err (!%p1592_p10)
}
  0x4e   : > { %s1596_s23 = scalar_lea.vmem %s2061_s7, 2048  ;;  %s1862_s4 = smov [#allocation9]  }
  0x4f   : > { %p1597_p11 = scmp.ne.s32.totalorder %s2061_s7, %s1596_s23  ;;  %s1601_s25 = sshll.u32 %s1862_s4, 4  ;;  %s1602_s25 = int_to_ptr.vmem [resolvable:$false] %s1601_s25 }
  0x50   : > { %s1603_s2 = scalar_lea.vmem %s1602_s25, 4096  ;;  %p1604_p1 = scmp.lt.s32.totalorder %s2061_s7, %s1602_s25 }
  0x51   : > { %p1599_p13 = pnand %p1597_p11, %p2516_p12  ;;  %p1605_p2 = scmp.lt.s32.totalorder %s1603_s2, %s1596_s23 }
  0x53   : > { %p1600_p9 = pneg %p1599_p13  ;;  %p1606_p4 = por %p1605_p2, %p1604_p1 }
  0x55   : > { %p1607_p3 = pnand %p1606_p4, %p1600_p9 }
  0x57   : > { %1610 = shalt.err (!%p1607_p3)
}
  0x58   : > { %s2507_s14 = smov 128   ;;  %s2508_s24 = smov 8  }
  0x59   : > { %1376 = dma.hbm_to_vmem [thread:$0]  (!%p2056_p5), %s2052_s27, 2048, %s2061_s7, %s2065_s22, %s2507_s14, %s2507_s14, %s2508_s24  }
  0x5a   : > { %s2546_s6 = sshll.u32 %s1853_s17, 11  ;;  %s371_s2 = scalar_lea.vmem [#allocation11], %s2045_s15 }
  0x5b   : > { %s2101_s25 = scalar_lea.hbm %s2488_s5, %s2546_s6  ;;  %s378_s26 = sshll.u32 %s371_s2, 4  ;;  %s2104_s26 = int_to_ptr.vmem [resolvable:$true] %s378_s26 }
  0x5c   : > { %s37_s3 = sadd.s32 1, %s1849_s16  ;;  %s47_s21 = sadd.s32 1, %s1837_s13 }
  0x5d   : > { %p38_p1 = scmp.ge.s32.totalorder %s37_s3, 2  ;;  %p54_p9 = scmp.ne.s32.totalorder %s1837_s13, %s1833_s12 }
  0x5e   : > { %p60_p0 = scmp.ne.s32.totalorder %s1833_s12, %s1829_s11  ;;  %s2548_s7 = sadd.s32 1, %s1853_s17 }
  0x5f   : > { %s2616_s3 = smov (%p38_p1, %s37_s3), 0  ;;  %s2618_s7 = smov (!%p38_p1, %s2548_s7), %s1853_s17 }
  0x60   : > { %2547 = sst [smem:[#allocation26_spill]] %s2616_s3  ;;  %s44_s27 = ssub.s32 %s1849_s16, %s2616_s3 }
  0x61   : > { %p2549_p6 = scmp.eq.s32.totalorder %s1857_s18, 0  ;;  %p42_p10 = scmp.ge.s32.totalorder %s2618_s7, 2 }
  0x62   : > { %p45_p11 = scmp.eq.s32.totalorder %s44_s27, 0  ;;  %p2551_p13 = scmp.eq.s32.totalorder %s1990_s19, 0 }
  0x63   : > { %p2121_p7 = por %p2549_p6, %p54_p9  ;;  %s295_s6 = sand.u32 1, %s1837_s13  }
  0x64   : > { %p2127_p2 = por %p2551_p13, %p60_p0  ;;  %s2620_s7 = smov (%p42_p10, %s2618_s7), 0 }
  0x65   : > { %2554 = sst [smem:[#allocation28_spill]] %s2620_s7  ;;  %s70_s4 = ssub.s32 %s1853_s17, %s2620_s7 }
  0x66   : > { %s2552_s11 = scalar_select %p2127_p2, 1, 0 }
  0x67   : > { %s2135_s23 = scalar_select %p45_p11, %s1837_s13, %s47_s21  }
  0x68   : > { %2553 = sst [smem:[#allocation27_spill]] %s2552_s11  ;;  %s72_s2 = sor.u32 %s70_s4, %s44_s27 }
  0x69   : > { %p120_p4 = scmp.eq.s32.totalorder %s70_s4, 0  ;;  %p2139_p3 = scmp.eq.s32.totalorder %s72_s2, 0 }
  0x6a   : > { %s1217_s24 = sshll.u32 %s295_s6, 3  ;;  %s2556_s3 = sadd.s32 1, %s1813_s29 }
  0x6b   : > { %s2146_s28 = scalar_select %p120_p4, %s1813_s29, %s2556_s3  }
  0x6c   : > { %s1298_s12 = sshll.u32 %s1849_s16, 7  ;;  %s2557_s0 = sld [smem:[#allocation29_spill]] }
  0x6d   : > { %s299_s21 = scalar_lea.vmem [#allocation3], %s1217_s24  ;;  %p2558_p1 = scmp.lt.s32.totalorder %s1857_s18, 4 }
  0x6e   : > { %s306_s27 = sshll.u32 %s299_s21, 4  ;;  %s2164_s3 = scalar_lea.sflag [#allocation4], %s295_s6  ;;  %s2154_s27 = int_to_ptr.vmem [resolvable:$true] %s306_s27 }
  0x6f   : > { %p2160_p9 = pnand %p2558_p1, %p2121_p7 }
  0x71   : > { %p1613_p6 = pneg %p2160_p9 }
  0x72   : > { %s2152_s22 = scalar_lea.hbm %s2557_s0, %s1298_s12  ;;  %s1616_s15 = scalar_lea.hbm %s2557_s0, 256 }
  0x73   : > { %s1611_s12 = scalar_lea.hbm %s2152_s22, 128  ;;  %p1617_p7 = scmp.lt.u32.totalorder %s2152_s22, %s2557_s0 }
  0x74   : > { %p1612_p0 = scmp.ne.s32.totalorder %s2152_s22, %s1611_s12  ;;  %p1618_p13 = scmp.lt.u32.totalorder %s1616_s15, %s1611_s12 }
  0x75   : > { %p1620_p1 = scmp.lt.u32.totalorder %s1611_s12, %s2152_s22 }
  0x76   : > { %p1614_p10 = pnand %p1613_p6, %p1612_p0  ;;  %p1619_p4 = por %p1618_p13, %p1617_p7 }
  0x78   : > { %p1615_p11 = pneg %p1614_p10  ;;  %p1621_p12 = por %p1620_p1, %p1619_p4 }
  0x7a   : > { %p1622_p8 = pnand %p1621_p12, %p1615_p11 }
  0x7c   : > { %1625 = shalt.err (!%p1622_p8)
}
  0x7d   : > { %s1626_s6 = scalar_lea.vmem %s2154_s27, 128  ;;  %s1865_s21 = smov [#allocation3]  }
  0x7e   : > { %p1627_p0 = scmp.ne.s32.totalorder %s2154_s27, %s1626_s6  ;;  %s1631_s20 = sshll.u32 %s1865_s21, 4  ;;  %s1632_s20 = int_to_ptr.vmem [resolvable:$false] %s1631_s20 }
  0x7f   : > { %s1633_s24 = scalar_lea.vmem %s1632_s20, 256  ;;  %p1634_p5 = scmp.lt.s32.totalorder %s2154_s27, %s1632_s20 }
  0x80   : > { %p1629_p10 = pnand %p1627_p0, %p1613_p6  ;;  %p1635_p7 = scmp.lt.s32.totalorder %s1633_s24, %s1626_s6 }
  0x82   : > { %p1630_p2 = pneg %p1629_p10  ;;  %p1636_p13 = por %p1635_p7, %p1634_p5 }
  0x84   : > { %p1637_p4 = pnand %p1636_p13, %p1630_p2 }
  0x86   : > { %1640 = shalt.err (!%p1637_p4)
}
  0x87   : > { %s2560_s12 = smov 4   ;;  %s2561_s15 = smov 64  }
  0x88   : > { %1370 = dma.hbm_to_vmem [thread:$0]  (!%p2160_p9), %s2152_s22, 128, %s2154_s27, %s2164_s3, %s2561_s15, %s2561_s15, %s2560_s12  }
  0x89   : > { %s75_s4 = sadd.s32 1, %s1825_s10  ;;  %p82_p8 = scmp.ne.s32.totalorder %s1825_s10, %s1821_s9 }
  0x8a   : > { %s2199_s11 = scalar_select %p2139_p3, %s1825_s10, %s75_s4  }
  0x8b   : > { %p88_p5 = scmp.ne.s32.totalorder %s1821_s9, %s1817_s30  ;;  %s318_s2 = sand.u32 1, %s1825_s10  }
  0x8c   : > { %s1221_s6 = sshll.u32 %s1849_s16, 1  ;;  %p2562_p12 = scmp.eq.s32.totalorder %s1857_s18, 0 }
  0x8d   : > { %p2563_p6 = scmp.eq.s32.totalorder %s1990_s19, 0  ;;  %s1220_s22 = sshll.u32 %s318_s2, 4 }
  0x8e   : > { %p84_p2 = por %p82_p8, %p2562_p12  ;;  %s1222_s14 = sshll.u32 %s1853_s17, 2 }
  0x8f   : > { %p2211_p11 = por %p88_p5, %p2563_p6  ;;  %s326_s27 = sadd.s32 %s1222_s14, %s1221_s6 }
  0x90   : > { %s1223_s3 = sshll.u32 %s326_s27, 7  ;;  %s320_s20 = scalar_lea.vmem [#allocation6], %s1220_s22 }
  0x91   : > { %s2564_s21 = scalar_select %p2211_p11, 1, 0 }
  0x92   : > { %s329_s24 = sshll.u32 %s320_s20, 4  ;;  %s2219_s0 = scalar_lea.hbm %s2484_s1, %s1223_s3  ;;  %s2221_s24 = int_to_ptr.vmem [resolvable:$true] %s329_s24 }
  0x93   : > { %p2565_p3 = scmp.lt.s32.totalorder %s1857_s18, 4  ;;  %s1641_s16 = scalar_lea.hbm %s2101_s25, 2048 }
  0x94   : > { %p1642_p1 = scmp.ne.s32.totalorder %s2101_s25, %s1641_s16  ;;  %p2567_p0 = scmp.ne.s32.totalorder %s2544_s8, 0 }
  0x95   : > { %p2225_p9 = pnand %p2565_p3, %p84_p2  ;;  %s1646_s22 = scalar_lea.hbm %s2488_s5, 4096 }
  0x96   : > { %p2568_p10 = pneg %p2567_p0  ;;  %p1647_p4 = scmp.lt.u32.totalorder %s2101_s25, %s2488_s5 }
  0x97   : > { %p1648_p8 = scmp.lt.u32.totalorder %s1646_s22, %s1641_s16  ;;  %p1650_p12 = scmp.lt.u32.totalorder %s1641_s16, %s2101_s25 }
  0x98   : > { %p1644_p7 = pnand %p1642_p1, %p2568_p10 }
  0x99   : > { %p1649_p5 = por %p1648_p8, %p1647_p4 }
  0x9a   : > { %p1645_p13 = pneg %p1644_p7 }
  0x9b   : > { %p1651_p2 = por %p1650_p12, %p1649_p5 }
  0x9d   : > { %p1652_p6 = pnand %p1651_p2, %p1645_p13 }
  0x9f   : > { %1655 = shalt.err (!%p1652_p6)
}
  0xa0   : > { %s1656_s3 = scalar_lea.vmem %s2104_s26, 2048  ;;  %p2569_p1 = pmov %p2568_p10 }
  0xa1   : > { %p1657_p3 = scmp.ne.s32.totalorder %s2104_s26, %s1656_s3  ;;  %s1866_s20 = smov [#allocation11]  }
  0xa2   : > { %s1661_s4 = sshll.u32 %s1866_s20, 4  ;;  %s1662_s4 = int_to_ptr.vmem [resolvable:$false] %s1661_s4 }
  0xa3   : > { %p1659_p10 = pnand %p1657_p3, %p2569_p1  ;;  %s1663_s30 = scalar_lea.vmem %s1662_s4, 4096 }
  0xa4   : > { %p1664_p11 = scmp.lt.s32.totalorder %s2104_s26, %s1662_s4  ;;  %p1665_p4 = scmp.lt.s32.totalorder %s1663_s30, %s1656_s3 }
  0xa5   : > { %p1660_p7 = pneg %p1659_p10 }
  0xa6   : > { %p1666_p8 = por %p1665_p4, %p1664_p11 }
  0xa8   : > { %p1667_p5 = pnand %p1666_p8, %p1660_p7 }
  0xaa   : > { %1670 = shalt.err (!%p1667_p5)
}
  0xab   : > { %s2570_s16 = sld [smem:[#allocation25_spill]]  ;;  %s2571_s2 = sand.u32 1, %s1857_s18  }
  0xac   : > { %s2258_s6 = scalar_lea.sflag [#allocation7], %s2571_s2  ;;  %s1671_s22 = scalar_lea.hbm %s2219_s0, 256 }
  0xad   : > { %p1672_p11 = scmp.ne.s32.totalorder %s2219_s0, %s1671_s22  ;;  %p1673_p13 = pneg %p2225_p9 }
  0xae   : > { %s1676_s27 = scalar_lea.hbm %s2484_s1, 1024  ;;  %p1677_p6 = scmp.lt.u32.totalorder %s2219_s0, %s2484_s1 }
  0xaf   : > { %p1674_p12 = pnand %p1673_p13, %p1672_p11  ;;  %p1680_p1 = scmp.lt.u32.totalorder %s1671_s22, %s2219_s0 }
  0xb1   : > { %1379 = dma.hbm_to_vmem [thread:$0]  (!%p2567_p0), %s2101_s25, 2048, %s2104_s26, %s2570_s16, %s2561_s15, %s2561_s15, %s2560_s12  }
  0xb2   : > { %p1675_p2 = pneg %p1674_p12  ;;  %p1678_p0 = scmp.lt.u32.totalorder %s1676_s27, %s1671_s22 }
  0xb4   : > { %p1679_p3 = por %p1678_p0, %p1677_p6 }
  0xb6   : > { %p1681_p10 = por %p1680_p1, %p1679_p3 }
  0xb8   : > { %p1682_p7 = pnand %p1681_p10, %p1675_p2 }
  0xba   : > { %1685 = shalt.err (!%p1682_p7)
}
  0xbb   : > { %s1686_s26 = scalar_lea.vmem %s2221_s24, 256  ;;  %s1867_s25 = smov [#allocation6]  }
  0xbc   : > { %p1687_p4 = scmp.ne.s32.totalorder %s2221_s24, %s1686_s26  ;;  %s1691_s12 = sshll.u32 %s1867_s25, 4  ;;  %s1692_s12 = int_to_ptr.vmem [resolvable:$false] %s1691_s12 }
  0xbd   : > { %s1693_s15 = scalar_lea.vmem %s1692_s12, 512  ;;  %p1694_p11 = scmp.lt.s32.totalorder %s2221_s24, %s1692_s12 }
  0xbe   : > { %p1689_p8 = pnand %p1687_p4, %p1673_p13  ;;  %p1695_p12 = scmp.lt.s32.totalorder %s1693_s15, %s1686_s26 }
  0xc0   : > { %p1690_p5 = pneg %p1689_p8  ;;  %p1696_p6 = por %p1695_p12, %p1694_p11 }
  0xc2   : > { %p1697_p0 = pnand %p1696_p6, %p1690_p5 }
  0xc4   : > { %1700 = shalt.err (!%p1697_p0)
}
  0xc5   : > { %s2572_s4 = smov 8   ;;  %s2573_s30 = smov 128  }
  0xc6   : > { %1373 = dma.hbm_to_vmem [thread:$0]  (!%p2225_p9), %s2219_s0, 256, %s2221_s24, %s2258_s6, %s2573_s30, %s2573_s30, %s2572_s4  }
  0xc7   : > { %s2574_s16 = sld [smem:[#allocation23_spill]] }
  0xcd   : > { %p2575_p13 = scmp.ne.s32.totalorder %s2574_s16, 0 }
  0xce   : > { %s2576_s2 = sld [smem:[#allocation19_spill]] (!%p2575_p13)  ;;  %s2577_s22 = sld [smem:[#allocation27_spill]] (!%p2575_p13) }
  0xcf   : > { %396 = sbr.rel (%p2575_p13) target bundleno = 1214 (0x4be), region = 52 }
  0xd4   : > { %s398_s8 = sand.u32 (!%p2575_p13), 1, %s2576_s2   ;;  %p2578_p2 = scmp.ne.s32.totalorder (!%p2575_p13), %s2577_s22, 0 }
  0xd5   : > { %s2292_s14 = sshll.u32 (!%p2575_p13), %s398_s8, 3  ;;  %s399_s27 = scalar_lea.sflag (!%p2575_p13), [#allocation4], %s398_s8 }
  0xd6   : > { %s402_s3 = scalar_lea.vmem [#allocation3], %s2292_s14 }
  0xd7   : > { %1784 = dma.done.wait (%p2578_p2), %s399_s27, 128  }
  0xd8   : > { %1786 = vsyncadd (%p2578_p2), %s399_s27, 4294967168  ;;  %s407_s0 = sand.u32 1, %s1990_s19   ;;  %s409_s7 = sand.u32 1, %s1821_s9  }
  0xd9   : > { %s2301_s24 = sshll.u32 %s409_s7, 4  ;;  %s408_s6 = scalar_lea.sflag [#allocation7], %s407_s0 }
  0xda   : > { %s411_s20 = scalar_lea.vmem [#allocation6], %s2301_s24  ;;  %p2579_p9 = scmp.ne.s32.totalorder %s2564_s21, 0 }
  0xdc   : > { %1788 = dma.done.wait (%p2579_p9), %s408_s6, 256  }
  0xdd   : > { %1790 = vsyncadd (%p2579_p9), %s408_s6, 4294967040  ;;  %p2580_p3 = scmp.eq.s32.totalorder %s1990_s19, 0 }
  0xdf   : > { %1792 = dma.done.wait (%p2580_p3), [#allocation7], 256   ;;  %p2581_p1 = pmov %p2580_p3 }
  0xe0   : > { %s2582_s26 = sld [smem:[#allocation18_spill]]  ;;  %s421_s4 = scalar_lea.sflag [#allocation10], %s407_s0 }
  0xe1   : > { %1794 = vsyncadd (%p2581_p1), [#allocation7], 4294967040  ;;  %s2583_s25 = sld [smem:[#allocation24_spill]] }
  0xe6   : > { %s422_s12 = sand.u32 1, %s2582_s26  }
  0xe7   : > { %s1234_s15 = sshll.u32 %s422_s12, 7  ;;  %p2584_p10 = scmp.ne.s32.totalorder %s2583_s25, 0 }
  0xe8   : > { %s2313_s30 = scalar_lea.vmem [#allocation9], %s1234_s15 }
  0xe9   : > { %1796 = dma.done.wait (%p2584_p10), %s421_s4, 4096  }
  0xea   : > { %1798 = vsyncadd (%p2584_p10), %s421_s4, 4294963200  ;;  %s2585_s21 = sld [smem:[#allocation21_spill]]  ;;  %s2586_s16 = sld [smem:[#allocation20_spill]] }
  0xeb   : > { %s2587_s27 = sld [smem:[#allocation33_spill]]  ;;  %s2588_s26 = sld [smem:[#allocation32_spill]] }
  0xec   : > { %s2335_s12 = scalar_lea.vmem [#allocation11], %s1234_s15 }
  0xf0   : > { %p485_p7 = scmp.lt.s32.totalorder %s2585_s21, 1  ;;  %p493_p4 = scmp.eq.s32.totalorder %s2585_s21, 0 }
  0xf1   : > { %p494_p8 = scmp.eq.s32.totalorder %s2586_s16, 0 }
  0xf2   : > { %s2622_s21 = smov (!%p485_p7, %s2585_s21), 1 }
  0xf3   : > { %p495_p5 = pnand %p494_p8, %p493_p4  ;;  %s1236_s2 = sshll.u32 %s2622_s21, 1 }
  0xf4   : > { %s491_s0 = scalar_lea.vmem %s2587_s27, %s2622_s21  ;;  %s2333_s25 = scalar_lea.vmem %s2588_s26, %s1236_s2  ;;  %v1508_v0 = vld [vmem:[#allocation8] sm:$0xff] (!%p495_p5)   ;;  %v1509_v1 = vld [vmem:[#allocation8 + $0x8] sm:$0xff] (!%p495_p5)  }
  0xf5   : > { %498 = sbr.rel (%p495_p5) target bundleno = 252 (0xfc), region = 76  ;;  %515 = vst [vmem:[#allocation2] sm:$0xff] (!%p495_p5), %v1508_v0  ;;  %516 = vst [vmem:[#allocation2 + $0x8] sm:$0xff] (!%p495_p5), %v1509_v1 }
  0xfc PF: > { %s2589_s4 = sld [smem:[#allocation21_spill]]  ;;  %v1868_v2 = vmov 0.0   ;;  %vm1869_vm0 = vmmov 0   ;;  %v1511_v3 = vld [vmem:[%s2313_s30 + $0x4] ss:$8 sps:$4 sm:$0xff]   ;;  %vm556_vm1 = vcmask 261120   ;;  %v620_v48 = vlaneseq }
  0xfd   : > { %1331 = vmatprep.subr.bf16.mxu0 %v1868_v2  ;;  %1335 = vmatprep.mubr.msk.bf16.mxu0 %vm1869_vm0, %v1868_v2  ;;  %v1513_v4 = vld [vmem:[%s2313_s30] ss:$8 sps:$4 sm:$0xff]   ;;  %v1514_v5 = vld [vmem:[%s2313_s30 + $0x14] ss:$8 sps:$4 sm:$0xff]   ;;  %v1516_v6 = vld [vmem:[%s2313_s30 + $0x10] ss:$8 sps:$4 sm:$0xff]  }
  0xfe   : > { %710 = vmatprep.subr.bf16.mxu1 %v1511_v3  ;;  %v1517_v7 = vld [vmem:[%s2313_s30 + $0x24] ss:$8 sps:$4 sm:$0xff]   ;;  %v1519_v8 = vld [vmem:[%s2313_s30 + $0x20] ss:$8 sps:$4 sm:$0xff]   ;;  %v1520_v9 = vld [vmem:[%s2313_s30 + $0x34] ss:$8 sps:$4 sm:$0xff]  }
  0xff   : > { %711 = vmatpush1.bf16.msra.mxu1 %v1513_v4  ;;  %v1522_v10 = vld [vmem:[%s2313_s30 + $0x30] ss:$8 sps:$4 sm:$0xff]   ;;  %v1523_v11 = vld [vmem:[%s2313_s30 + $0x44] ss:$8 sps:$4 sm:$0xff]   ;;  %v1525_v12 = vld [vmem:[%s2313_s30 + $0x40] ss:$8 sps:$4 sm:$0xff]  }
 0x100   : > { %712 = vmatprep.subr.bf16.mxu1 %v1514_v5  ;;  %v1526_v15 = vld [vmem:[%s2313_s30 + $0x54] ss:$8 sps:$4 sm:$0xff]   ;;  %v1510_v16 = vld [vmem:[%s402_s3] sm:$0xff]   ;;  %v1528_v17 = vld [vmem:[%s2313_s30 + $0x50] ss:$8 sps:$4 sm:$0xff]   ;;  %v1870_v22 = vmov 0  }
 0x101   : > { %v1529_v18 = vld [vmem:[%s2313_s30 + $0x64] ss:$8 sps:$4 sm:$0xff]   ;;  %v1531_v19 = vld [vmem:[%s2313_s30 + $0x60] ss:$8 sps:$4 sm:$0xff]   ;;  %v1532_v20 = vld [vmem:[%s2313_s30 + $0x74] ss:$8 sps:$4 sm:$0xff]   ;;  %742 = vmatprep.mubr.bf16.mxu1 %v1870_v22 }
 0x102   : > { %s529_s16 = sadd.s32 1, %s2589_s4  ;;  %p517_p11 = scmp.lt.s32.totalorder %s2589_s4, 0  ;;  %v1534_v21 = vld [vmem:[%s2313_s30 + $0x70] ss:$8 sps:$4 sm:$0xff]   ;;  %v1535_v23 = vld [vmem:[%s2335_s12 + $0x40] sm:$0xff]   ;;  %v1537_v25 = vld [vmem:[%s2335_s12 + $0x48] sm:$0xff]  }
 0x103   : > { %p530_p12 = scmp.lt.s32.totalorder %s529_s16, 0  ;;  %s531_s2 = ssub.s32 0, %s529_s16  ;;  %713 = vmatpush1.bf16.msra.mxu1 %v1516_v6  ;;  %v1536_v24 = vld [vmem:[%s2335_s12] sm:$0xff]   ;;  %v1538_v26 = vld [vmem:[%s2335_s12 + $0x8] sm:$0xff]   ;;  %v1539_v27 = vld [vmem:[%s2335_s12 + $0x50] sm:$0xff]   ;;  %v2385_v49 = vshrl.u32 %v620_v48, 7 }
 0x104   : > { %s1242_s15 = smin.u32 %s531_s2, %s529_s16  ;;  %s518_s22 = ssub.s32 0, %s2589_s4  ;;  %714 = vmatprep.subr.bf16.mxu1 %v1517_v7  ;;  %v1540_v28 = vld [vmem:[%s2335_s12 + $0x10] sm:$0xff]   ;;  %v1541_v29 = vld [vmem:[%s2335_s12 + $0x58] sm:$0xff]   ;;  %v1543_v31 = vld [vmem:[%s2335_s12 + $0x60] sm:$0xff]  }
 0x105   : > { %s533_s8 = sand.u32 1, %s1242_s15   ;;  %s1239_s27 = smin.u32 %s2589_s4, %s518_s22  ;;  %v1542_v30 = vld [vmem:[%s2335_s12 + $0x18] sm:$0xff]   ;;  %v1544_v32 = vld [vmem:[%s2335_s12 + $0x20] sm:$0xff]   ;;  %v1545_v33 = vld [vmem:[%s2335_s12 + $0x68] sm:$0xff]   ;;  %v622_v50 = vsub.s32 0, %v2385_v49  ;;  %v626_v52 = vsub.s32 1, %v2385_v49 }
 0x106   : > { %s534_s7 = ssub.s32 0, %s533_s8  ;;  %s520_s6 = sand.u32 1, %s1239_s27   ;;  %v549_v34 = vld [vmem:[%s411_s20] sm:$0xff]  ;;  %v550_v36 = vld [vmem:[%s411_s20 + $0x8] sm:$0xff] }
 0x107   : > { %s2624_s7 = smov (!%p530_p12, %s534_s7), %s533_s8  ;;  %s521_s26 = ssub.s32 0, %s520_s6  ;;  %715 = vmatpush1.bf16.msra.mxu1 %v1519_v8  ;;  %v1546_v43 = vld [vmem:[%s2335_s12 + $0x28] sm:$0xff]   ;;  %v1547_v44 = vld [vmem:[%s2335_s12 + $0x70] sm:$0xff]   ;;  %v1549_v46 = vld [vmem:[%s2335_s12 + $0x78] sm:$0xff]  }
 0x108   : > { %p1244_p6 = scmp.lt.s32.totalorder %s2624_s7, 0  ;;  %s540_s2 = sadd.s32 2, %s2624_s7  ;;  %716 = vmatprep.subr.bf16.mxu1 %v1520_v9  ;;  %v1548_v45 = vld [vmem:[%s2335_s12 + $0x30] sm:$0xff]   ;;  %v1550_v47 = vld [vmem:[%s2335_s12 + $0x38] sm:$0xff]   ;;  %v618_v51 = vld [vmem:[%s2333_s25] sm:$0x3] }
 0x109   : > { %s2626_s26 = smov (!%p517_p11, %s521_s26), %s520_s6  ;;  %v623_v53 = vrot.slane %v618_v51, %v622_v50  ;;  %v627_v54 = vrot.slane %v618_v51, %v626_v52  ;;  %s2590_s14 = sld [smem:[#allocation20_spill]]  ;;  %v1265_v6 = vld [vmem:[%s491_s0] ss:$0 sm:$0xff] }
 0x10a   : > { %s2628_s2 = smov (!%p1244_p6, %s540_s2), %s2624_s7  ;;  %p1241_p0 = scmp.lt.s32.totalorder %s2626_s26, 0 }
 0x10b   : > { %s527_s16 = sadd.s32 2, %s2626_s26  ;;  %717 = vmatpush1.bf16.msra.mxu1 %v1522_v10  ;;  %p936_p13 = scmp.eq.s32.totalorder %s2589_s4, 1 }
 0x10c   : > { %s2630_s16 = smov (!%p1241_p0, %s527_s16), %s2626_s26  ;;  %718 = vmatprep.subr.bf16.mxu1 %v1523_v11  ;;  %p1283_p2 = scmp.ne.s32.totalorder %s2589_s4, 1 }
 0x10d   : > { %s1301_s15 = sshll.u32 %s2630_s16, 4  ;;  %s1284_s12 = sshll.u32 (!%p1283_p2), %s2628_s2, 1 }
 0x10e   : > { %s544_s22 = scalar_lea.vmem [#allocation2], %s1301_s15 }
 0x10f   : > { %v545_v13 = vld [vmem:[%s544_s22] sm:$0xff]  ;;  %v546_v14 = vld [vmem:[%s544_s22 + $0x8] sm:$0xff]  ;;  %719 = vmatpush1.bf16.msra.mxu1 %v1525_v12  ;;  %s1282_s3 = sshll.u32 %s2590_s14, 4 }
 0x110   : > { %1332 = vmatpush3.bf16.msra.mxu0 %v545_v13  ;;  %720 = vmatprep.subr.bf16.mxu1 %v1526_v15  ;;  %s941_s25 = sshra.s32 (!%p1283_p2), %s1282_s3, 4 }
 0x111   : > { %1333 = vmatprep.subr.bf16.mxu0 %v1868_v2  ;;  %s944_s8 = sadd.s32 (!%p1283_p2), %s1284_s12, %s941_s25 }
 0x112   : > { %s1285_s27 = sshll.u32 (!%p1283_p2), %s944_s8, 3 }
 0x113   : > { %721 = vmatpush1.bf16.msra.mxu1 %v1528_v17  ;;  %s946_s7 = scalar_lea.vmem (!%p1283_p2), [#allocation2], %s1285_s27 }
 0x114   : > { %1334 = vmatpush3.bf16.msra.mxu0 %v546_v14  ;;  %722 = vmatprep.subr.bf16.mxu1 %v1529_v18 }
 0x115   : > { %1306 = vmatprep.subr.bf16.mxu0 %v1535_v23 }
 0x117   : > { %1336 = vmatmul.mubr.msk.bf16.vlgmr.msra.gmra.mrb[0].mxu0 %vm556_vm1, %v1510_v16  ;;  %723 = vmatpush1.bf16.msra.mxu1 %v1531_v19 }
 0x118   : > { %724 = vmatprep.subr.bf16.mxu1 %v1532_v20  ;;  %1307 = vmatpush3.bf16.msra.mxu0 %v1536_v24 }
 0x119   : > { %1308 = vmatprep.subr.bf16.mxu0 %v1537_v25 }
 0x11b   : > { %725 = vmatpush1.bf16.msra.mxu1 %v1534_v21 }
 0x11c   : > { %1309 = vmatpush3.bf16.msra.mxu0 %v1538_v26 }
 0x11d   : > { %1310 = vmatprep.subr.bf16.mxu0 %v1539_v27 }
 0x120   : > { %1311 = vmatpush3.bf16.msra.mxu0 %v1540_v28 }
 0x121   : > { %1312 = vmatprep.subr.bf16.mxu0 %v1541_v29 }
 0x124   : > { %1313 = vmatpush3.bf16.msra.mxu0 %v1542_v30 }
 0x125   : > { %1314 = vmatprep.subr.bf16.mxu0 %v1543_v31 }
 0x128   : > { %1315 = vmatpush3.bf16.msra.mxu0 %v1544_v32 }
 0x129   : > { %1316 = vmatprep.subr.bf16.mxu0 %v1545_v33 }
 0x12c   : > { %1317 = vmatpush3.bf16.msra.mxu0 %v1546_v43 }
 0x12d   : > { %1318 = vmatprep.subr.bf16.mxu0 %v1547_v44 }
 0x130   : > { %1319 = vmatpush3.bf16.msra.mxu0 %v1548_v45 }
 0x131   : > { %1320 = vmatprep.subr.bf16.mxu0 %v1549_v46 }
 0x134   : > { %1321 = vmatpush3.bf16.msra.mxu0 %v1550_v47 }
 0x1ea   : > { %v594_v35 = vpop.f32.mrb[0].mxu0 }
 0x1eb   : > { %v1337_v37 = vpop.f32.mrb[1].mxu0  ;;  %v595_v39 = vadd.f32 %v594_v35, %v549_v34 }
 0x1ec   : > { %v597_v38 = vpop.f32.mrb[2].mxu0 }
 0x1ed   : > { %v598_v40 = vadd.f32 %v597_v38, %v550_v36  ;;  %v1338_v41 = vpop.f32.mrb[3].mxu0 }
 0x1ef   : > { %v601_v42 = vpack.c.bf16 %v598_v40, %v595_v39 }
 0x1f1   : > { %743 = vmatmul.mubr.bf16.vlgmr.msra.gmra.mrb[0].mxu1 %v601_v42 }
 0x2c4   : > { %v744_v55 = vpop.f32.mrb[0].mxu1 }
 0x2c5   : > { %v745_v56 = vadd.f32 %v744_v55, %v623_v53  ;;  %v746_v57 = vpop.f32.mrb[1].mxu1 }
 0x2c6   : > { %v747_v58 = vadd.f32 %v746_v57, %v627_v54  ;;  %v748_v59 = vpop.f32.mrb[2].mxu1 }
 0x2c7   : > { %v749_v60 = vadd.f32 %v748_v59, %v623_v53  ;;  %v750_v61 = vpop.f32.mrb[3].mxu1  ;;  %v753_v63 = vmax.f32 %v745_v56, 0.0 }
 0x2c8   : > { %v751_v62 = vadd.f32 %v750_v61, %v627_v54  ;;  %v754_v1 = vmax.f32 %v747_v58, 0.0 }
 0x2c9   : > { %v755_v0 = vmax.f32 %v749_v60, 0.0 }
 0x2ca   : > { %v756_v2 = vmax.f32 %v751_v62, 0.0 }
 0x2cb   : > { %v757_v3 = vpack.c.bf16 %v755_v0, %v753_v63 }
 0x2cc   : > { %v758_v4 = vpack.c.bf16 %v756_v2, %v754_v1 }
 0x2ce   : > { %926 = vmatprep.mubr.bf16.mxu0 %v758_v4 }
 0x2cf   : > { %927 = vmatmul.mubr.bf16.vlgmr.msra.gmra.mrb[4].mxu0 %v757_v3 }
 0x3a2   : > { %v1322_v5 = vpop.f32.mrb[4].mxu0  ;;  %939 = sbr.rel (%p1283_p2) target bundleno = 941 (0x3ad), region = 80 }
 0x3a3   : > { %v1323_v7 = vpop.f32.mrb[5].mxu0 }
 0x3a4   : > { %v1324_v8 = vadd.f32 %v1323_v7, %v1322_v5  ;;  %v1325_v9 = vpop.f32.mrb[6].mxu0 }
 0x3a5   : > { %v1326_v10 = vpop.f32.mrb[7].mxu0 }
 0x3a6   : > { %v929_v11 = vadd.f32 %v1324_v8, %v1265_v6  ;;  %v1327_v12 = vadd.f32 %v1326_v10, %v1325_v9 }
 0x3a8   : > { %v932_v13 = vadd.f32 %v1327_v12, %v1265_v6 }
 0x3aa   : > { %v940_v14 = vpack.c.bf16 %v932_v13, %v929_v11 }
 0x3ac   : > { %947 = vst [vmem:[%s946_s7] sm:$0xff] %v940_v14 }
 0x3ad PF: > { %951 = sbr.rel (%p936_p13) target bundleno = 948 (0x3b4), region = 84  ;;  %v952_v15 = vmax.f32 (!%p936_p13), %v929_v11, 0.0  ;;  %v953_v16 = vmax.f32 (!%p936_p13), %v932_v13, 0.0  ;;  %s955_s0 = sshra.s32 (!%p936_p13), %s1282_s3, 4 }
 0x3ae   : > { %s1287_s6 = sshll.u32 (!%p936_p13), %s2628_s2, 1 }
 0x3af   : > { %s958_s26 = sadd.s32 (!%p936_p13), %s1287_s6, %s955_s0  ;;  %v954_v17 = vpack.c.bf16 (!%p936_p13), %v953_v16, %v952_v15 }
 0x3b0   : > { %s1288_s4 = sshll.u32 (!%p936_p13), %s958_s26, 3 }
 0x3b1   : > { %s960_s16 = scalar_lea.vmem (!%p936_p13), [#allocation2], %s1288_s4 }
 0x3b2   : > { %961 = vst [vmem:[%s960_s16] sm:$0xff] (!%p936_p13), %v954_v17 }
 0x3b4 PF: > { %s2593_s15 = sld [smem:[#allocation20_spill]] }
 0x3ba   : > { %p962_p9 = scmp.eq.s32.totalorder %s2593_s15, 1 }
 0x3bc   : > { %p963_p3 = pnand %p962_p9, %p936_p13 }
 0x3bd   : > { %s1302_s14 = sshll.u32 (!%p963_p3), %s2628_s2, 4  ;;  %s2595_s30 = sld [smem:[#allocation34_spill]] (!%p963_p3)  ;;  %v1871_v19 = vmov (!%p963_p3), 0.0   ;;  %vm1872_vm2 = vmmov (!%p963_p3), 0  }
 0x3be   : > { %966 = sbr.rel (%p963_p3) target bundleno = 1183 (0x49f), region = 88  ;;  %1339 = vmatprep.subr.bf16.mxu0 (!%p963_p3), %v1871_v19  ;;  %1343 = vmatprep.mubr.msk.bf16.mxu0 (!%p963_p3), %vm1872_vm2, %v1871_v19  ;;  %s969_s3 = scalar_lea.vmem (!%p963_p3), [#allocation2], %s1302_s14 }
 0x3bf   : > { %v970_v20 = vld [vmem:[%s969_s3] sm:$0xff] (!%p963_p3)  ;;  %v971_v23 = vld [vmem:[%s969_s3 + $0x8] sm:$0xff] (!%p963_p3) }
 0x3c0   : > { %1340 = vmatpush3.bf16.msra.mxu0 (!%p963_p3), %v970_v20 }
 0x3c1   : > { %1341 = vmatprep.subr.bf16.mxu0 (!%p963_p3), %v1871_v19 }
 0x3c3   : > { %v1291_v18 = vld [vmem:[%s2595_s30] ss:$0 sm:$0xff] (!%p963_p3) }
 0x3c4   : > { %vm979_vm3 = vcmp.eq.s32.totalorder (!%p963_p3), %v2385_v49, %v1291_v18  ;;  %1342 = vmatpush3.bf16.msra.mxu0 (!%p963_p3), %v971_v23 }
 0x3c5   : > { %v1292_v21 = vsel %vm979_vm3, 1.0, %v1871_v19 }
 0x3c6   : > { %v1026_v22 = vsel %vm556_vm1, %v1292_v21, 0.0  ;;  %v982_v24 = vpack.c.bf16 %v1292_v21, %v1292_v21 }
 0x3c7   : > { %1027 = vadd.xlane.f32.xlu0 %v1026_v22 }
 0x3c8   : > { %1344 = vmatmul.mubr.msk.bf16.vlgmr.msra.gmra.mrb[0].mxu0 %vm556_vm1, %v982_v24 }
 0x454   : > { %v1028_v25 = vpop.xlane.xlu0 %1027 }
 0x455   : > { %v1029_v26 = vmax.f32 %v1028_v25, 1.0 }
 0x457   : > { %1551 = vrcp.f32 %v1029_v26 }
 0x461   : > { %v1552_v27 = vpop.eup %1551 }
 0x49b   : > { %v1020_v28 = vpop.f32.mrb[0].mxu0 }
 0x49c   : > { %v1031_v29 = vmul.f32 %v1552_v27, %v1020_v28  ;;  %v1345_v30 = vpop.f32.mrb[1].mxu0 }
 0x49d   : > { %v1023_v31 = vpop.f32.mrb[2].mxu0 }
 0x49e   : > { %1032 = vst [vmem:[#allocation12] sm:$0xff] %v1031_v29  ;;  %v1346_v32 = vpop.f32.mrb[3].mxu0 }
 0x49f PF: > { %p1383_p1 = scmp.eq.s32.totalorder %s1990_s19, 3  ;;  %s1873_s2 = smov [#allocation12]  }
 0x4a0   : > { %s1040_s25 = sshll.u32 %s1873_s2, 4  ;;  %s1041_s25 = int_to_ptr.vmem [resolvable:$true] %s1040_s25 }
 0x4a1   : > { %s1701_s12 = scalar_lea.vmem %s1041_s25, 128  ;;  %p1708_p8 = scmp.lt.s32.totalorder %s1041_s25, %s1041_s25 }
 0x4a2   : > { %p1702_p10 = scmp.ne.s32.totalorder %s1041_s25, %s1701_s12  ;;  %p1709_p5 = scmp.lt.s32.totalorder %s1701_s12, %s1701_s12 }
 0x4a4   : > { %p1703_p7 = pnand %p1702_p10, %p1383_p1  ;;  %p1710_p11 = por %p1709_p5, %p1708_p8 }
 0x4a6   : > { %p1704_p4 = pneg %p1703_p7 }
 0x4a8   : > { %p1711_p12 = pnand %p1710_p11, %p1704_p4 }
 0x4aa   : > { %1714 = shalt.err (!%p1711_p12)
}
 0x4ab   : > { %s2596_s7 = sld [smem:[#allocation35_spill]] }
 0x4b1   : > { %s1715_s21 = scalar_lea.hbm %s2596_s7, 128 }
 0x4b2   : > { %p1716_p6 = scmp.ne.s32.totalorder %s2596_s7, %s1715_s21  ;;  %p1721_p2 = scmp.lt.u32.totalorder %s1715_s21, %s2596_s7 }
 0x4b4   : > { %p1717_p0 = pnand %p1716_p6, %p1383_p1 }
 0x4b6   : > { %p1718_p13 = pneg %p1717_p0 }
 0x4b8   : > { %p1723_p9 = pnand %p1721_p2, %p1718_p13 }
 0x4ba   : > { %1726 = shalt.err (!%p1723_p9)
}
 0x4bb   : > { %1360 = dma.vmem_to_hbm [thread:$0]  (%p1383_p1), %s1041_s25, 128, %s2596_s7, [#allocation5]  }
 0x4bc   : > { %1800 = dma.done.wait (%p1383_p1), [#allocation5], 128  }
 0x4bd   : > { %1802 = vsyncadd (%p1383_p1), [#allocation5], 4294967168 }
 0x4be PF: > { %s28_s18 = sadd.s32 1, %s1857_s18   ;;  %s2598_s27 = sld [smem:[#allocation18_spill]] }
 0x4bf   : > { %p2436_p3 = scmp.ge.s32.totalorder %s28_s18, 6   ;;  %s2599_s14 = smov %s2146_s28 }
 0x4c0   : > { %s2600_s24 = sld [smem:[#allocation19_spill]]  ;;  %s2601_s20 = sld [smem:[#allocation22_spill]] }
 0x4c1   : > { %s2602_s16 = sld [smem:[#allocation26_spill]]  ;;  %s2603_s19 = sld [smem:[#allocation28_spill]] }
 0x4c2   : > { %s2604_s28 = smov %s1813_s29  ;;  %s2605_s29 = smov %s2599_s14 }
 0x4c3   : > { %s2606_s30 = smov %s1821_s9  ;;  %s2607_s9 = smov %s1825_s10 }
 0x4c4   : > { %s2608_s10 = smov %s2199_s11  ;;  %s2610_s12 = smov %s1837_s13 }
 0x4c5   : > { %s2611_s13 = smov %s2135_s23  ;;  %s2613_s15 = smov %s1853_s17 }
 0x4c6   : > { %s2609_s11 = smov %s2600_s24  ;;  %s2612_s14 = smov %s2601_s20 }
 0x4c7   : > { %s2614_s17 = smov %s2603_s19  ;;  %27 = sbr.rel (!%p2436_p3) target bundleno = 21 (0x15), region = 156 }
 0x4ce   :  { %1053 = vsyncpa [#allocation4], 1 }
 0x4cf   :  { %1055 = vsyncpa [#allocation4 + $0x1], 1 }
 0x4d0   :  { %1056 = vsyncpa [#allocation7], 1 }
 0x4d1   :  { %1058 = vsyncpa [#allocation7 + $0x1], 1 }
 0x4d2   :  { %1059 = vsyncpa [#allocation10], 1 }
 0x4d3   :  { %1061 = vsyncpa [#allocation10 + $0x1], 1 }
 0x4d4   :  { %1062 = vsyncpa [#allocation5], 1 }
 0x4d5   :  { %1064 = vsyncpa [#allocation5 + $0x1], 1 }

</bundles_post_ra>
